<compile_context>
chip_gen: v7x
topology: tpu7x:2x2x1
jax: 0.10.0
libtpu: 0.0.40
codegen_flags: <defaults>
</compile_context>

<pallas_src>
import functools

import jax
import jax.numpy as jnp
from jax import lax
from jax.experimental import pallas as pl
from jax.experimental.pallas import tpu as pltpu


def _round_up(x, m):
    return (x + m - 1) // m * m


def _device_kind():
    try:
        return jax.devices()[0].device_kind.lower()
    except Exception:
        return ""


def _vmem_capacity_bytes():
    """Per-core VMEM capacity; falls back to the most conservative value (v7x)."""
    try:
        return int(pltpu.get_tpu_info().vmem_capacity_bytes)
    except Exception:
        pass
    kind = _device_kind()
    if "v7" in kind:
        return 64 * 1024 * 1024
    return 128 * 1024 * 1024 if kind else 64 * 1024 * 1024


def _row_sums(a, p, n, use_mxu_reduce):
    """Per-row sums over D of a*a, p*p, n*n, a*p, a*n; each returned as (tb, 1) f32."""
    _, D = a.shape
    if use_mxu_reduce:
        # XLU (2 units on v6e/v7x) is the binding slot for small-D lane reduces,
        # while the MXU is idle in this kernel: reduce via matmul with ones.
        ones = jnp.ones((D, 128), jnp.float32)

        def red(x):
            return jnp.dot(x, ones, preferred_element_type=jnp.float32)[:, :1]

        return red(a * a), red(p * p), red(n * n), red(a * p), red(a * n)

    if D > 128 and D % 128 == 0:
        # One pass over D in 128-lane chunks with five VPU lane-partial
        # accumulators; exactly one cross-lane (XLU) reduce per quantity.
        sl0 = slice(0, 128)
        a0, p0, n0 = a[:, sl0], p[:, sl0], n[:, sl0]
        acc_aa = a0 * a0
        acc_pp = p0 * p0
        acc_nn = n0 * n0
        acc_ap = a0 * p0
        acc_an = a0 * n0
        for c in range(1, D // 128):
            sl = slice(c * 128, (c + 1) * 128)
            ac, pc, nc = a[:, sl], p[:, sl], n[:, sl]
            acc_aa = acc_aa + ac * ac
            acc_pp = acc_pp + pc * pc
            acc_nn = acc_nn + nc * nc
            acc_ap = acc_ap + ac * pc
            acc_an = acc_an + ac * nc

        def red(x):
            return jnp.sum(x, axis=-1, keepdims=True)

        return red(acc_aa), red(acc_pp), red(acc_nn), red(acc_ap), red(acc_an)

    def red(x):
        return jnp.sum(x, axis=-1, keepdims=True)

    return red(a * a), red(p * p), red(n * n), red(a * p), red(a * n)


def _contrastive_loss_kernel(a_ref, p_ref, n_ref, out_ref, *, margin, batch, tb,
                             use_mxu_reduce):
    i = pl.program_id(0)

    a = a_ref[...].astype(jnp.float32)
    p = p_ref[...].astype(jnp.float32)
    n = n_ref[...].astype(jnp.float32)

    sq_a, sq_p, sq_n, dot_ap, dot_an = _row_sums(a, p, n, use_mxu_reduce)

    # (torch CosineSimilarity eps=1e-8)^2; rsqrt(max(||x||^2*||y||^2, eps^2)) is
    # exactly 1 / max(||x||*||y||, eps), and rsqrt runs on the EUP slot.
    eps_sq = jnp.float32(1e-16)
    pos_sim = dot_ap * lax.rsqrt(jnp.maximum(sq_a * sq_p, eps_sq))
    neg_sim = dot_an * lax.rsqrt(jnp.maximum(sq_a * sq_n, eps_sq))

    loss = jnp.maximum(jnp.float32(margin) - pos_sim + neg_sim, jnp.float32(0.0))  # (tb, 1)

    # Mask padded tail rows (B % tb != 0) BEFORE any reduction so garbage rows
    # (possibly NaN/Inf) cannot contaminate the partial sum.
    row_ids = i * tb + lax.broadcasted_iota(jnp.int32, loss.shape, 0)
    loss = jnp.where(row_ids < batch, loss, jnp.float32(0.0))

    out_ref[...] = jnp.full(out_ref.shape, jnp.sum(loss), dtype=jnp.float32)


def _contrastive_loss_ref(anchor, positive, negative, *, margin=1.0):
    """Plain-JAX reference (also the tiny-problem / degenerate fallback path)."""
    eps = jnp.float32(1e-8)

    def cos(x, y):
        x = x.astype(jnp.float32)
        y = y.astype(jnp.float32)
        num = jnp.sum(x * y, axis=-1)
        den = jnp.maximum(
            jnp.linalg.norm(x, axis=-1) * jnp.linalg.norm(y, axis=-1), eps)
        return num / den

    pos_sim = cos(anchor, positive)
    neg_sim = cos(anchor, negative)
    return jnp.mean(jnp.maximum(jnp.float32(margin) - pos_sim + neg_sim, 0.0))


def contrastive_loss(anchor, positive, negative, *, margin: float = 1.0,
                     temperature: float = 0.07, block_rows=None):
    """Pallas TPU implementation of ContrastiveLoss.forward.

    anchor, positive, negative: (B, D) arrays (f32 or bf16). Returns scalar f32 loss.
    `temperature` is unused in the reference forward pass (kept for parity).
    `block_rows` optionally overrides the batch tile size (rounded down to x16).
    """
    assert anchor.shape == positive.shape == negative.shape
    assert anchor.ndim == 2
    B, D = anchor.shape

    # Tiny / degenerate problems (incl. B == 0 -> nan like torch.mean of empty):
    # XLA fusion beats kernel-launch overhead and avoids wasted lanes.
    if block_rows is None and (B < 64 or D < 128):
        return _contrastive_loss_ref(anchor, positive, negative, margin=margin)

    itemsize = jnp.dtype(anchor.dtype).itemsize
    kind = _device_kind()
    vmem_cap = _vmem_capacity_bytes()
    # Leave half of VMEM for compiler-internal scratch + output buffers:
    # 32 MiB on v7x (64 MiB/TC), 64 MiB on v5e/v6e (128 MiB).
    vmem_limit = int(min(vmem_cap // 2, 64 * 1024 * 1024))

    # Extremely large D: even a 16-row double-buffered block would blow VMEM.
    # TODO(synk): add a D-chunked (2-D grid) variant for f32 D >~ 64k.
    if block_rows is None and 3 * 2 * 16 * D * itemsize > (3 * vmem_limit) // 4:
        return _contrastive_loss_ref(anchor, positive, negative, margin=margin)

    if block_rows is None:
        # Per-input block byte target: big enough to amortize the ~0.35 us per
        # grid-step fixed cost, small enough that 3 inputs x 2 pipeline buffers
        # stay well under the VMEM limit (<= ~12 MiB on v7x, ~24 MiB on v5e/v6e).
        per_input_target = (2 if "v7" in kind else 4) * 1024 * 1024
        tb = per_input_target // (D * itemsize)
        tb = max(16, min(8192, (tb // 16) * 16))

        # Megacore: keep >= 2 grid blocks (both TensorCores get work) whenever the
        # blocks stay >= ~256 KiB/input; prefer ~8 blocks when they stay >= ~1 MiB.
        min_rows = max(16, ((256 * 1024) // (D * itemsize) // 16) * 16)
        big_rows = max(16, ((1024 * 1024) // (D * itemsize) // 16) * 16)
        if B >= 2 * min_rows:
            tb = min(tb, _round_up(pl.cdiv(B, 2), 16))
        if B >= 8 * big_rows:
            tb = min(tb, _round_up(pl.cdiv(B, 8), 16))
    else:
        tb = max(16, (int(block_rows) // 16) * 16)

    tb = max(16, min(tb, _round_up(B, 16)))  # sublane-aligned for f32 and bf16
    num_blocks = pl.cdiv(B, tb)

    # Offload small-D lane reduces to the idle MXU on v6e/v7x; v5e is DMA-bound
    # here so it keeps the plain VPU/XLU path.
    use_mxu_reduce = (D <= 256) and not any(v in kind for v in ("v2", "v3", "v4", "v5"))

    kernel = functools.partial(
        _contrastive_loss_kernel, margin=float(margin), batch=B, tb=tb,
        use_mxu_reduce=use_mxu_reduce)

    cost = pl.CostEstimate(
        flops=10 * B * D,
        transcendentals=2 * B,
        bytes_accessed=3 * B * D * itemsize + num_blocks * 8 * 128 * 4,
    )

    partials = pl.pallas_call(
        kernel,
        out_shape=jax.ShapeDtypeStruct((num_blocks, 8, 128), jnp.float32),
        grid=(num_blocks,),
        in_specs=[
            pl.BlockSpec((tb, D), lambda i: (i, 0)),
            pl.BlockSpec((tb, D), lambda i: (i, 0)),
            pl.BlockSpec((tb, D), lambda i: (i, 0)),
        ],
        out_specs=pl.BlockSpec((1, 8, 128), lambda i: (i, 0, 0)),
        compiler_params=pltpu.CompilerParams(
            dimension_semantics=("parallel",),
            vmem_limit_bytes=vmem_limit,
        ),
        cost_estimate=cost,
    )(anchor, positive, negative)

    # Final reduction over per-block partial sums; divide by the true batch size.
    return jnp.sum(partials[:, 0, 0]) / jnp.float32(B)


if __name__ == "__main__":
    key = jax.random.PRNGKey(0)
    k1, k2, k3 = jax.random.split(key, 3)

    # Shapes sized to exercise the tiled Pallas path: multi-block grid + masked tail.
    B, D = 200, 128
    anchor = jax.random.normal(k1, (B, D), dtype=jnp.float32)
    positive = jax.random.normal(k2, (B, D), dtype=jnp.float32)
    negative = jax.random.normal(k3, (B, D), dtype=jnp.float32)

    ref = _contrastive_loss_ref(anchor, positive, negative, margin=1.0)

    # Forced multi-block grid: 4 blocks of 64 rows, last block rows 200..255 masked.
    loss = jax.block_until_ready(
        contrastive_loss(anchor, positive, negative, margin=1.0, block_rows=64))
    assert jnp.allclose(loss, ref, atol=2e-5, rtol=1e-5), (loss, ref)

    # Auto-tiled path (derived tb) must also match.
    loss_auto = jax.block_until_ready(
        contrastive_loss(anchor, positive, negative, margin=1.0))
    assert jnp.allclose(loss_auto, ref, atol=2e-5, rtol=1e-5), (loss_auto, ref)

    # bf16 inputs: DMA'd natively, upcast per-tile inside the kernel.
    a16 = anchor.astype(jnp.bfloat16)
    p16 = positive.astype(jnp.bfloat16)
    n16 = negative.astype(jnp.bfloat16)
    ref16 = _contrastive_loss_ref(a16, p16, n16, margin=1.0)
    loss16 = jax.block_until_ready(
        contrastive_loss(a16, p16, n16, margin=1.0, block_rows=128))
    assert jnp.allclose(loss16, ref16, atol=2e-2, rtol=2e-2), (loss16, ref16)

    # Tiny-problem dispatch (plain-JAX fallback path) still gives the right answer.
    a_s = jax.random.normal(k1, (8, 32), dtype=jnp.float32)
    p_s = jax.random.normal(k2, (8, 32), dtype=jnp.float32)
    n_s = jax.random.normal(k3, (8, 32), dtype=jnp.float32)
    loss_small = jax.block_until_ready(contrastive_loss(a_s, p_s, n_s, margin=1.0))
    ref_small = _contrastive_loss_ref(a_s, p_s, n_s, margin=1.0)
    assert jnp.allclose(loss_small, ref_small, atol=1e-6), (loss_small, ref_small)

    print("KERNEL_OK")
</pallas_src>

<mosaic_0001>
module attributes {stable_mosaic.version = 11 : i64} {
  func.func @_contrastive_loss_kernel(%arg0: i32, %arg1: memref<64x128xf32, #tpu.memory_space<vmem>>, %arg2: memref<64x128xf32, #tpu.memory_space<vmem>>, %arg3: memref<64x128xf32, #tpu.memory_space<vmem>>, %arg4: memref<1x8x128xf32, #tpu.memory_space<vmem>>) attributes {dimension_semantics = [#tpu.dimension_semantics<parallel>], iteration_bounds = array<i64: 4>, scalar_prefetch = 0 : i64, scratch_operands = 0 : i64, tpu.core_type = #tpu.core_type<tc>, window_params = [{transform_indices = @transform_0, window_bounds = array<i64: 64, 128>}, {transform_indices = @transform_1, window_bounds = array<i64: 64, 128>}, {transform_indices = @transform_2, window_bounds = array<i64: 64, 128>}, {transform_indices = @transform_3, window_bounds = array<i64: 1, 8, 128>}]} {
    %c0 = arith.constant 0 : index
    %c0_0 = arith.constant 0 : index
    %0 = vector.load %arg1[%c0, %c0_0] : memref<64x128xf32, #tpu.memory_space<vmem>>, vector<64x128xf32>
    %c0_1 = arith.constant 0 : index
    %c0_2 = arith.constant 0 : index
    %1 = vector.load %arg2[%c0_1, %c0_2] : memref<64x128xf32, #tpu.memory_space<vmem>>, vector<64x128xf32>
    %c0_3 = arith.constant 0 : index
    %c0_4 = arith.constant 0 : index
    %2 = vector.load %arg3[%c0_3, %c0_4] : memref<64x128xf32, #tpu.memory_space<vmem>>, vector<64x128xf32>
    %cst = arith.constant 1.000000e+00 : f32
    %3 = vector.broadcast %cst : f32 to vector<128x128xf32>
    %4 = arith.mulf %0, %0 : vector<64x128xf32>
    %cst_5 = arith.constant dense<0.000000e+00> : vector<64x128xf32>
    %5 = tpu.matmul %4, %3, %cst_5 {dimension_numbers = #tpu.dot_dimension_numbers<[1], [0], [0], [1], [0, 0, 1, 1], [], []>} : vector<64x128xf32>, vector<128x128xf32>, vector<64x128xf32> -> vector<64x128xf32>
    %6 = vector.extract_strided_slice %5 {offsets = [0, 0], sizes = [64, 1], strides = [1, 1]} : vector<64x128xf32> to vector<64x1xf32>
    %7 = arith.mulf %1, %1 : vector<64x128xf32>
    %cst_6 = arith.constant dense<0.000000e+00> : vector<64x128xf32>
    %8 = tpu.matmul %7, %3, %cst_6 {dimension_numbers = #tpu.dot_dimension_numbers<[1], [0], [0], [1], [0, 0, 1, 1], [], []>} : vector<64x128xf32>, vector<128x128xf32>, vector<64x128xf32> -> vector<64x128xf32>
    %9 = vector.extract_strided_slice %8 {offsets = [0, 0], sizes = [64, 1], strides = [1, 1]} : vector<64x128xf32> to vector<64x1xf32>
    %10 = arith.mulf %2, %2 : vector<64x128xf32>
    %cst_7 = arith.constant dense<0.000000e+00> : vector<64x128xf32>
    %11 = tpu.matmul %10, %3, %cst_7 {dimension_numbers = #tpu.dot_dimension_numbers<[1], [0], [0], [1], [0, 0, 1, 1], [], []>} : vector<64x128xf32>, vector<128x128xf32>, vector<64x128xf32> -> vector<64x128xf32>
    %12 = vector.extract_strided_slice %11 {offsets = [0, 0], sizes = [64, 1], strides = [1, 1]} : vector<64x128xf32> to vector<64x1xf32>
    %13 = arith.mulf %0, %1 : vector<64x128xf32>
    %cst_8 = arith.constant dense<0.000000e+00> : vector<64x128xf32>
    %14 = tpu.matmul %13, %3, %cst_8 {dimension_numbers = #tpu.dot_dimension_numbers<[1], [0], [0], [1], [0, 0, 1, 1], [], []>} : vector<64x128xf32>, vector<128x128xf32>, vector<64x128xf32> -> vector<64x128xf32>
    %15 = vector.extract_strided_slice %14 {offsets = [0, 0], sizes = [64, 1], strides = [1, 1]} : vector<64x128xf32> to vector<64x1xf32>
    %16 = arith.mulf %0, %2 : vector<64x128xf32>
    %cst_9 = arith.constant dense<0.000000e+00> : vector<64x128xf32>
    %17 = tpu.matmul %16, %3, %cst_9 {dimension_numbers = #tpu.dot_dimension_numbers<[1], [0], [0], [1], [0, 0, 1, 1], [], []>} : vector<64x128xf32>, vector<128x128xf32>, vector<64x128xf32> -> vector<64x128xf32>
    %18 = vector.extract_strided_slice %17 {offsets = [0, 0], sizes = [64, 1], strides = [1, 1]} : vector<64x128xf32> to vector<64x1xf32>
    %19 = arith.mulf %6, %9 : vector<64x1xf32>
    %cst_10 = arith.constant 1.000000e-16 : f32
    %20 = vector.broadcast %cst_10 : f32 to vector<64x1xf32>
    %21 = arith.maximumf %19, %20 : vector<64x1xf32>
    %22 = math.rsqrt %21 : vector<64x1xf32>
    %23 = arith.mulf %15, %22 : vector<64x1xf32>
    %24 = arith.mulf %6, %12 : vector<64x1xf32>
    %cst_11 = arith.constant 1.000000e-16 : f32
    %25 = vector.broadcast %cst_11 : f32 to vector<64x1xf32>
    %26 = arith.maximumf %24, %25 : vector<64x1xf32>
    %27 = math.rsqrt %26 : vector<64x1xf32>
    %28 = arith.mulf %18, %27 : vector<64x1xf32>
    %cst_12 = arith.constant 1.000000e+00 : f32
    %29 = vector.broadcast %cst_12 : f32 to vector<64x1xf32>
    %30 = arith.subf %29, %23 : vector<64x1xf32>
    %31 = arith.addf %30, %28 : vector<64x1xf32>
    %cst_13 = arith.constant 0.000000e+00 : f32
    %32 = vector.broadcast %cst_13 : f32 to vector<64x1xf32>
    %33 = arith.maximumf %31, %32 : vector<64x1xf32>
    %c64_i32 = arith.constant 64 : i32
    %34 = arith.muli %arg0, %c64_i32 : i32
    %35 = tpu.iota {dimensions = array<i32: 0>} : vector<64x1xi32>
    %36 = vector.broadcast %34 : i32 to vector<64x1xi32>
    %37 = arith.addi %36, %35 : vector<64x1xi32>
    %c200_i32 = arith.constant 200 : i32
    %38 = vector.broadcast %c200_i32 : i32 to vector<64x1xi32>
    %39 = arith.cmpi slt, %37, %38 : vector<64x1xi32>
    %cst_14 = arith.constant 0.000000e+00 : f32
    %40 = vector.broadcast %cst_14 : f32 to vector<64x1xf32>
    %41 = arith.select %39, %33, %40 : vector<64x1xi1>, vector<64x1xf32>
    %42 = vector.shape_cast %41 : vector<64x1xf32> to vector<1x64x1xf32>
    %cst_15 = arith.constant dense<0.000000e+00> : vector<1xf32>
    %43 = vector.multi_reduction <add>, %42, %cst_15 [1, 2] : vector<1x64x1xf32> to vector<1xf32>
    %44 = vector.shape_cast %43 : vector<1xf32> to vector<1x1x1xf32>
    %45 = vector.extract %44[0, 0, 0] : f32 from vector<1x1x1xf32>
    %46 = vector.broadcast %45 : f32 to vector<1x8x128xf32>
    %c0_16 = arith.constant 0 : index
    %c0_17 = arith.constant 0 : index
    %c0_18 = arith.constant 0 : index
    %47 = vector.load %arg4[%c0_16, %c0_17, %c0_18] : memref<1x8x128xf32, #tpu.memory_space<vmem>>, vector<1x8x128xf32>
    tpu.vector_store %arg4[%c0_16, %c0_17, %c0_18], %46 {strides = array<i32>} : memref<1x8x128xf32, #tpu.memory_space<vmem>>, vector<1x8x128xf32>,
    return
  }
  func.func @transform_0(%arg0: i32) -> (i32, i32) {
    %c0_i32 = arith.constant 0 : i32
    %c0_i32_0 = arith.constant 0 : i32
    return %arg0, %c0_i32 : i32, i32
  }
  func.func @transform_1(%arg0: i32) -> (i32, i32) {
    %c0_i32 = arith.constant 0 : i32
    %c0_i32_0 = arith.constant 0 : i32
    return %arg0, %c0_i32 : i32, i32
  }
  func.func @transform_2(%arg0: i32) -> (i32, i32) {
    %c0_i32 = arith.constant 0 : i32
    %c0_i32_0 = arith.constant 0 : i32
    return %arg0, %c0_i32 : i32, i32
  }
  func.func @transform_3(%arg0: i32) -> (i32, i32, i32) {
    %c0_i32 = arith.constant 0 : i32
    %c0_i32_0 = arith.constant 0 : i32
    %c0_i32_1 = arith.constant 0 : i32
    return %arg0, %c0_i32, %c0_i32_0 : i32, i32, i32
  }
}

</mosaic_0001>

<bundles_post_ra>
// kernel: tpu_custom_call.1
= control target key start
LH: loop header
LB: loop body
LE: loop exit
PB: predicated region body
PF: predicated region fallthrough
CT: control target
= control target key end

     0   :  { %8 = vsyncpa [#allocation3], 0  ;;  %s2463_s0 = inlined_call_operand.hbm [shape: f32[200,128], index: 0, kind: input, shape index: {}]   ;;  %s2464_s1 = inlined_call_operand.hbm [shape: f32[200,128], index: 1, kind: input, shape index: {}]   ;;  %s2465_s2 = inlined_call_operand.hbm [shape: f32[200,128], index: 2, kind: input, shape index: {}]   ;;  %s2466_s3 = inlined_call_operand.hbm [shape: f32[4,8,128], index: 3, kind: output, shape index: {}]  }
   0x1   :  { %10 = vsyncpa [#allocation3 + $0x1], 0 }
   0x2   :  { %11 = vsyncpa [#allocation6], 0 }
   0x3   :  { %13 = vsyncpa [#allocation6 + $0x1], 0 }
   0x4   :  { %14 = vsyncpa [#allocation4], 0 }
   0x5   :  { %16 = vsyncpa [#allocation4 + $0x1], 0  ;;  %s1908_s12 = smov 0   ;;  %s1910_s13 = smov 0  }
   0x6   :  { %s1912_s14 = smov 0   ;;  %s1914_s15 = smov 0  }
   0x7 LB: > { %s1929_s16 = sadd.s32 4294967295, %s1875_s15   ;;  %s1165_s17 = sadd.s32 4294967294, %s1875_s15   ;;  %s1875_s15 = sphi %s1914_s15, %s2477_s15   ;;  %s1871_s14 = sphi %s1912_s14, %s2476_s14   ;;  %s1867_s13 = sphi %s1910_s13, %s2475_s13   ;;  %s1863_s12 = sphi %s1908_s12, %s2474_s12  }
   0x8   : > { %s1933_s18 = sadd.s32 1, %s1875_s15   ;;  %s29_s19 = sadd.s32 1, %s1871_s14 }
   0x9   : > { %s26_s20 = ssub.s32 %s1875_s15, %s1933_s18  ;;  %p36_p0 = scmp.ne.s32.totalorder %s1871_s14, %s1867_s13 }
   0xa   : > { %p27_p1 = scmp.eq.s32.totalorder %s26_s20, 0  ;;  %p37_p2 = scmp.eq.s32.totalorder %s1875_s15, 0 }
   0xb   : > { %p42_p3 = scmp.ne.s32.totalorder %s1867_s13, %s1863_s12  ;;  %p43_p4 = scmp.eq.s32.totalorder %s1929_s16, 0 }
   0xc   : > { %s1945_s21 = scalar_select %p27_p1, %s1871_s14, %s29_s19  }
   0xd   : > { %p1947_p5 = por %p37_p2, %p36_p0  ;;  %p1951_p6 = por %p43_p4, %p42_p3 }
   0xe   : > { %p118_p7 = scmp.eq.s32.totalorder %s1929_s16, 3  ;;  %p124_p8 = scmp.eq.s32.totalorder %s1165_s17, 3 }
   0xf   : > { %p1167_p11 = scmp.ge.s32.totalorder %s1875_s15, 4 }
  0x10   : > { %p1956_p9 = por %p118_p7, %p36_p0  ;;  %p1960_p10 = por %p124_p8, %p42_p3 }
  0x11   : > { %140 = sbr.rel (%p1167_p11) target bundleno = 129 (0x81), region = 16 }
  0x12   : > { %s2470_s24 = scalar_select %p1956_p9, 1, 0 }
  0x13   : > { %s2471_s25 = scalar_select %p1960_p10, 1, 0 }
  0x18   : > { %143 = sbr.rel (!%p1947_p5) target bundleno = 59 (0x3b), region = 20  ;;  %s144_s26 = sand.u32 (%p1947_p5), 1, %s1871_s14  }
  0x19   : > { %s1169_s27 = sshll.u32 (%p1947_p5), %s1875_s15, 3  ;;  %s1168_s28 = sshll.u32 (%p1947_p5), %s144_s26, 6 }
  0x1a   : > { %s150_s29 = ssub.s32 (%p1947_p5), 25, %s1169_s27  ;;  %s1972_s5 = scalar_lea.sflag (%p1947_p5), [#allocation3], %s144_s26 }
  0x1b   : > { %p151_p12 = scmp.lt.s32.totalorder (%p1947_p5), %s150_s29, 8  ;;  %s148_s6 = scalar_lea.vmem (%p1947_p5), [#allocation2], %s1168_s28 }
  0x1f   : > { %s2479_s29 = smov (!%p151_p12, %s150_s29), 8 }
  0x20   : > { %s1969_s30 = sshll.u32 %s2479_s29, 7 }
  0x21   : > { %s155_s4 = ssub.s32 1024, %s1969_s30 }
  0x22   : > { %156 = vsyncadd %s1972_s5, %s155_s4  ;;  %p1171_p13 = scmp.ne.s32.totalorder %s1969_s30, 0  ;;  %s1199_s7 = sshll.u32 %s1875_s15, 10 }
  0x23   : > { %s1980_s10 = scalar_lea.hbm %s2463_s0, %s1199_s7  ;;  %s161_s11 = sshll.u32 %s148_s6, 4  ;;  %s1982_s11 = int_to_ptr.vmem [resolvable:$true] %s161_s11 }
  0x24   : > { %s1721_s17 = scalar_lea.hbm %s1980_s10, %s1969_s30  ;;  %s1725_s26 = scalar_lea.hbm %s2463_s0, 3200 }
  0x25   : > { %p1722_p0 = scmp.ne.s32.totalorder %s1980_s10, %s1721_s17  ;;  %p1726_p3 = scmp.lt.u32.totalorder %s1980_s10, %s2463_s0 }
  0x26   : > { %p1727_p4 = scmp.lt.u32.totalorder %s1725_s26, %s1721_s17  ;;  %p1729_p8 = scmp.lt.u32.totalorder %s1721_s17, %s1980_s10 }
  0x27   : > { %p1723_p1 = pnand %p1722_p0, %p1171_p13 }
  0x28   : > { %p1728_p7 = por %p1727_p4, %p1726_p3 }
  0x29   : > { %p1724_p2 = pneg %p1723_p1 }
  0x2a   : > { %p1730_p11 = por %p1729_p8, %p1728_p7 }
  0x2c   : > { %p1731_p12 = pnand %p1730_p11, %p1724_p2 }
  0x2e   : > { %1734 = shalt.err (!%p1731_p12)
}
  0x2f   : > { %s1735_s29 = scalar_lea.vmem %s1982_s11, %s1969_s30  ;;  %s1877_s4 = smov [#allocation2]  }
  0x30   : > { %p1736_p0 = scmp.ne.s32.totalorder %s1982_s11, %s1735_s29  ;;  %s1739_s6 = sshll.u32 %s1877_s4, 4  ;;  %s1740_s6 = int_to_ptr.vmem [resolvable:$false] %s1739_s6 }
  0x31   : > { %s1741_s7 = scalar_lea.vmem %s1740_s6, 2048  ;;  %p1742_p9 = scmp.lt.s32.totalorder %s1982_s11, %s1740_s6 }
  0x32   : > { %p1737_p1 = pnand %p1736_p0, %p1171_p13  ;;  %p1743_p3 = scmp.lt.s32.totalorder %s1741_s7, %s1735_s29 }
  0x34   : > { %p1738_p10 = pneg %p1737_p1  ;;  %p1744_p4 = por %p1743_p3, %p1742_p9 }
  0x36   : > { %p1745_p7 = pnand %p1744_p4, %p1738_p10 }
  0x38   : > { %1748 = shalt.err (!%p1745_p7)
}
  0x39   : > { %s1878_s8 = smov 128   ;;  %s1879_s9 = smov 8  }
  0x3a   : > { %167 = dma.hbm_to_vmem [thread:$0]  (%p1171_p13), %s1980_s10, %s1969_s30, %s1982_s11, %s1972_s5, %s1878_s8, %s1878_s8, %s1879_s9  }
  0x3b PF: > { %170 = sbr.rel (!%p1947_p5) target bundleno = 94 (0x5e), region = 24  ;;  %s171_s17 = sand.u32 (%p1947_p5), 1, %s1875_s15  }
  0x3c   : > { %s173_s19 = sand.u32 (%p1947_p5), 1, %s1871_s14   ;;  %s1176_s26 = sshll.u32 (%p1947_p5), %s1875_s15, 3 }
  0x3d   : > { %s1175_s20 = sshll.u32 (%p1947_p5), %s173_s19, 6  ;;  %s177_s27 = ssub.s32 (%p1947_p5), 25, %s1176_s26 }
  0x3e   : > { %p178_p9 = scmp.lt.s32.totalorder (%p1947_p5), %s177_s27, 8  ;;  %s2017_s4 = scalar_lea.sflag (%p1947_p5), [#allocation6], %s171_s17 }
  0x3f   : > { %s175_s30 = scalar_lea.vmem (%p1947_p5), [#allocation5], %s1175_s20 }
  0x42   : > { %s2481_s27 = smov (!%p178_p9, %s177_s27), 8 }
  0x43   : > { %s2014_s28 = sshll.u32 %s2481_s27, 7 }
  0x44   : > { %s182_s29 = ssub.s32 1024, %s2014_s28 }
  0x45   : > { %183 = vsyncadd %s2017_s4, %s182_s29  ;;  %p1178_p10 = scmp.ne.s32.totalorder %s2014_s28, 0  ;;  %s1200_s5 = sshll.u32 %s1875_s15, 10 }
  0x46   : > { %s2025_s6 = scalar_lea.hbm %s2464_s1, %s1200_s5  ;;  %s188_s7 = sshll.u32 %s175_s30, 4  ;;  %s2027_s7 = int_to_ptr.vmem [resolvable:$true] %s188_s7 }
  0x47   : > { %s1749_s8 = scalar_lea.hbm %s2025_s6, %s2014_s28  ;;  %s1753_s19 = scalar_lea.hbm %s2464_s1, 3200 }
  0x48   : > { %p1750_p13 = scmp.ne.s32.totalorder %s2025_s6, %s1749_s8  ;;  %p1754_p11 = scmp.lt.u32.totalorder %s2025_s6, %s2464_s1 }
  0x49   : > { %p1755_p12 = scmp.lt.u32.totalorder %s1753_s19, %s1749_s8  ;;  %p1757_p1 = scmp.lt.u32.totalorder %s1749_s8, %s2025_s6 }
  0x4a   : > { %p1751_p2 = pnand %p1750_p13, %p1178_p10 }
  0x4b   : > { %p1756_p0 = por %p1755_p12, %p1754_p11 }
  0x4c   : > { %p1752_p8 = pneg %p1751_p2 }
  0x4d   : > { %p1758_p3 = por %p1757_p1, %p1756_p0 }
  0x4f   : > { %p1759_p4 = pnand %p1758_p3, %p1752_p8 }
  0x51   : > { %1762 = shalt.err (!%p1759_p4)
}
  0x52   : > { %s1763_s27 = scalar_lea.vmem %s2027_s7, %s2014_s28  ;;  %s1880_s29 = smov [#allocation5]  }
  0x53   : > { %p1764_p7 = scmp.ne.s32.totalorder %s2027_s7, %s1763_s27  ;;  %s1767_s30 = sshll.u32 %s1880_s29, 4  ;;  %s1768_s30 = int_to_ptr.vmem [resolvable:$false] %s1767_s30 }
  0x54   : > { %s1769_s5 = scalar_lea.vmem %s1768_s30, 2048  ;;  %p1770_p2 = scmp.lt.s32.totalorder %s2027_s7, %s1768_s30 }
  0x55   : > { %p1765_p9 = pnand %p1764_p7, %p1178_p10  ;;  %p1771_p11 = scmp.lt.s32.totalorder %s1769_s5, %s1763_s27 }
  0x57   : > { %p1766_p13 = pneg %p1765_p9  ;;  %p1772_p12 = por %p1771_p11, %p1770_p2 }
  0x59   : > { %p1773_p0 = pnand %p1772_p12, %p1766_p13 }
  0x5b   : > { %1776 = shalt.err (!%p1773_p0)
}
  0x5c   : > { %s1881_s10 = smov 128   ;;  %s1882_s11 = smov 8  }
  0x5d   : > { %194 = dma.hbm_to_vmem [thread:$0]  (%p1178_p10), %s2025_s6, %s2014_s28, %s2027_s7, %s2017_s4, %s1881_s10, %s1881_s10, %s1882_s11  }
  0x5e PF: > { %197 = sbr.rel (!%p1947_p5) target bundleno = 129 (0x81), region = 28  ;;  %s198_s8 = sand.u32 (%p1947_p5), 1, %s1875_s15  }
  0x5f   : > { %s200_s9 = sand.u32 (%p1947_p5), 1, %s1871_s14   ;;  %s1183_s19 = sshll.u32 (%p1947_p5), %s1875_s15, 3 }
  0x60   : > { %s1182_s17 = sshll.u32 (%p1947_p5), %s200_s9, 6  ;;  %s204_s20 = ssub.s32 (%p1947_p5), 25, %s1183_s19 }
  0x61   : > { %p205_p8 = scmp.lt.s32.totalorder (%p1947_p5), %s204_s20, 8  ;;  %s2062_s29 = scalar_lea.sflag (%p1947_p5), [#allocation6], %s198_s8 }
  0x62   : > { %s202_s28 = scalar_lea.vmem (%p1947_p5), [#allocation7], %s1182_s17 }
  0x65   : > { %s2483_s20 = smov (!%p205_p8, %s204_s20), 8 }
  0x66   : > { %s2059_s26 = sshll.u32 %s2483_s20, 7 }
  0x67   : > { %s209_s27 = ssub.s32 1024, %s2059_s26 }
  0x68   : > { %210 = vsyncadd %s2062_s29, %s209_s27  ;;  %p1185_p5 = scmp.ne.s32.totalorder %s2059_s26, 0  ;;  %s1201_s22 = sshll.u32 %s1875_s15, 10 }
  0x69   : > { %s2070_s7 = scalar_lea.hbm %s2465_s2, %s1201_s22  ;;  %s215_s30 = sshll.u32 %s202_s28, 4  ;;  %s2072_s30 = int_to_ptr.vmem [resolvable:$true] %s215_s30 }
  0x6a   : > { %s1777_s5 = scalar_lea.hbm %s2070_s7, %s2059_s26  ;;  %s1781_s8 = scalar_lea.hbm %s2465_s2, 3200 }
  0x6b   : > { %p1778_p10 = scmp.ne.s32.totalorder %s2070_s7, %s1777_s5  ;;  %p1782_p4 = scmp.lt.u32.totalorder %s2070_s7, %s2465_s2 }
  0x6c   : > { %p1783_p7 = scmp.lt.u32.totalorder %s1781_s8, %s1777_s5  ;;  %p1785_p13 = scmp.lt.u32.totalorder %s1777_s5, %s2070_s7 }
  0x6d   : > { %p1779_p1 = pnand %p1778_p10, %p1185_p5 }
  0x6e   : > { %p1784_p9 = por %p1783_p7, %p1782_p4 }
  0x6f   : > { %p1780_p3 = pneg %p1779_p1 }
  0x70   : > { %p1786_p2 = por %p1785_p13, %p1784_p9 }
  0x72   : > { %p1787_p11 = pnand %p1786_p2, %p1780_p3 }
  0x74   : > { %1790 = shalt.err (!%p1787_p11)
}
  0x75   : > { %s1791_s19 = scalar_lea.vmem %s2072_s30, %s2059_s26  ;;  %s1883_s20 = smov [#allocation7]  }
  0x76   : > { %p1792_p12 = scmp.ne.s32.totalorder %s2072_s30, %s1791_s19  ;;  %s1795_s27 = sshll.u32 %s1883_s20, 4  ;;  %s1796_s27 = int_to_ptr.vmem [resolvable:$false] %s1795_s27 }
  0x77   : > { %s1797_s28 = scalar_lea.vmem %s1796_s27, 2048  ;;  %p1798_p10 = scmp.lt.s32.totalorder %s2072_s30, %s1796_s27 }
  0x78   : > { %p1793_p0 = pnand %p1792_p12, %p1185_p5  ;;  %p1799_p1 = scmp.lt.s32.totalorder %s1797_s28, %s1791_s19 }
  0x7a   : > { %p1794_p8 = pneg %p1793_p0  ;;  %p1800_p4 = por %p1799_p1, %p1798_p10 }
  0x7c   : > { %p1801_p7 = pnand %p1800_p4, %p1794_p8 }
  0x7e   : > { %1804 = shalt.err (!%p1801_p7)
}
  0x7f   : > { %s1884_s22 = smov 128   ;;  %s1885_s4 = smov 8  }
  0x80   : > { %221 = dma.hbm_to_vmem [thread:$0]  (%p1185_p5), %s2070_s7, %s2059_s26, %s2072_s30, %s2062_s29, %s1884_s22, %s1884_s22, %s1885_s4  }
  0x81 PF: > { %p1189_p3 = scmp.ge.s32.totalorder %s1875_s15, 1  ;;  %p223_p9 = scmp.lt.s32.totalorder %s1875_s15, 5 }
  0x83   : > { %p224_p13 = pnand %p1189_p3, %p223_p9 }
  0x84   : > { %s2102_s6 = sand.u32 (!%p224_p13), 1, %s1867_s13  }
  0x85   : > { %227 = sbr.rel (%p224_p13) target bundleno = 697 (0x2b9), region = 32  ;;  %s2105_s5 = sshll.u32 (!%p224_p13), %s2102_s6, 6 }
  0x86   : > { %s230_s10 = scalar_lea.sflag (!%p224_p13), [#allocation3], %s2102_s6  ;;  %s2109_s11 = scalar_lea.vmem (!%p224_p13), [#allocation2], %s2105_s5 }
  0x8c   : > { %1850 = dma.done.wait (%p1951_p6), %s230_s10, 1024  }
  0x8d   : > { %1852 = vsyncadd (%p1951_p6), %s230_s10, 4294966272  ;;  %s238_s26 = sand.u32 1, %s1929_s16   ;;  %s2117_s7 = scalar_lea.vmem [#allocation5], %s2105_s5 }
  0x8e   : > { %s239_s29 = scalar_lea.sflag [#allocation6], %s238_s26 }
  0x8f   : > { %1854 = dma.done.wait (%p1951_p6), %s239_s29, 2048  }
  0x90   : > { %1856 = vsyncadd (%p1951_p6), %s239_s29, 4294965248  ;;  %v1886_v0 = vmov 1.0|1.0   ;;  %v2134_v1 = vld [vmem:[%s2109_s11] sm:$0xff]  ;;  %v2162_v5 = vld [vmem:[%s2109_s11 + $0x8] sm:$0xff]  ;;  %s2246_s23 = scalar_lea.vmem [#allocation7], %s2105_s5 }
  0x91   : > { %1542 = vmatprep.subr.bf16.mxu0 %v1886_v0  ;;  %1558 = vmatprep.subr.bf16.mxu1 %v1886_v0  ;;  %v2137_v2 = vld [vmem:[%s2117_s7] sm:$0xff]  ;;  %v323_v3 = vmul.f32 %v2134_v1, %v2134_v1  ;;  %v2165_v6 = vld [vmem:[%s2117_s7 + $0x8] sm:$0xff]  ;;  %v324_v7 = vmul.f32 %v2162_v5, %v2162_v5  ;;  %v2174_v9 = vld [vmem:[%s2109_s11 + $0x10] sm:$0xff]  ;;  %s1194_s30 = sshll.u32 %s1929_s16, 6  ;;  %vm1011_vm1 = vcmask 7168   ;;  %s1193_s8 = sshll.u32 %s2102_s6, 3 }
  0x92   : > { %1543 = vmatpush3.bf16.msra.mxu0 %v1886_v0  ;;  %1559 = vmatpush3.bf16.msra.mxu1 %v1886_v0  ;;  %v436_v4 = vmul.f32 %v2137_v2, %v2137_v2  ;;  %v437_v8 = vmul.f32 %v2165_v6, %v2165_v6  ;;  %v2177_v10 = vld [vmem:[%s2117_s7 + $0x10] sm:$0xff]  ;;  %v2182_v11 = vld [vmem:[%s2109_s11 + $0x18] sm:$0xff]  ;;  %v325_v13 = vmul.f32 %v2174_v9, %v2174_v9  ;;  %v2198_v17 = vld [vmem:[%s2109_s11 + $0x20] sm:$0xff]  ;;  %s283_s9 = scalar_lea.vmem [#allocation8], %s1193_s8  ;;  %s1196_s19 = sshll.u32 %s1929_s16, 7 }
  0x93   : > { %1544 = vmatprep.subr.bf16.mxu0 %v1886_v0  ;;  %1560 = vmatprep.subr.bf16.mxu1 %v1886_v0  ;;  %v2185_v12 = vld [vmem:[%s2117_s7 + $0x18] sm:$0xff]  ;;  %v438_v14 = vmul.f32 %v2177_v10, %v2177_v10  ;;  %v326_v15 = vmul.f32 %v2182_v11, %v2182_v11  ;;  %v2201_v18 = vld [vmem:[%s2117_s7 + $0x20] sm:$0xff]  ;;  %v2206_v19 = vld [vmem:[%s2109_s11 + $0x28] sm:$0xff]  ;;  %v327_v21 = vmul.f32 %v2198_v17, %v2198_v17  ;;  %s1052_s17 = sshll.u32 %s283_s9, 4  ;;  %s2422_s22 = scalar_lea.hbm %s2466_s3, %s1196_s19  ;;  %s2417_s17 = int_to_ptr.vmem [resolvable:$true] %s1052_s17 }
  0x94   : > { %1354 = vmatprep.mubr.f32.mxu0 %v323_v3  ;;  %1398 = vmatprep.mubr.f32.mxu1 %v436_v4  ;;  %v439_v16 = vmul.f32 %v2185_v12, %v2185_v12  ;;  %v2209_v20 = vld [vmem:[%s2117_s7 + $0x28] sm:$0xff]  ;;  %v440_v22 = vmul.f32 %v2201_v18, %v2201_v18  ;;  %v328_v23 = vmul.f32 %v2206_v19, %v2206_v19  ;;  %v2222_v25 = vld [vmem:[%s2109_s11 + $0x30] sm:$0xff]  ;;  %v2230_v27 = vld [vmem:[%s2109_s11 + $0x38] sm:$0xff]  ;;  %s1039_s4 = scalar_lea.sflag [#allocation4], %s2102_s6  ;;  %s1805_s5 = scalar_lea.vmem %s2417_s17, 128 }
  0x95   : > { %v441_v24 = vmul.f32 %v2209_v20, %v2209_v20  ;;  %v2225_v26 = vld [vmem:[%s2117_s7 + $0x30] sm:$0xff]  ;;  %v2233_v28 = vld [vmem:[%s2117_s7 + $0x38] sm:$0xff]  ;;  %v329_v29 = vmul.f32 %v2222_v25, %v2222_v25  ;;  %v330_v31 = vmul.f32 %v2230_v27, %v2230_v27  ;;  %v2249_v33 = vld [vmem:[%s2246_s23] sm:$0xff]  ;;  %v662_v34 = vmul.f32 %v2137_v2, %v2134_v1  ;;  %p1806_p6 = scmp.ne.s32.totalorder %s2417_s17, %s1805_s5  ;;  %p2472_p5 = scmp.ne.s32.totalorder %s2470_s24, 0 }
  0x96   : > { %1545 = vmatpush3.bf16.msra.mxu0 %v1886_v0  ;;  %1561 = vmatpush3.bf16.msra.mxu1 %v1886_v0  ;;  %v442_v30 = vmul.f32 %v2225_v26, %v2225_v26  ;;  %v443_v32 = vmul.f32 %v2233_v28, %v2233_v28  ;;  %v549_v35 = vmul.f32 %v2249_v33, %v2249_v33  ;;  %v2272_v36 = vld [vmem:[%s2246_s23 + $0x8] sm:$0xff]  ;;  %v2279_v37 = vld [vmem:[%s2246_s23 + $0x10] sm:$0xff]  ;;  %v2288_v40 = vld [vmem:[%s2246_s23 + $0x18] sm:$0xff]  ;;  %s1887_s16 = smov [#allocation8]  }
  0x97   : > { %1546 = vmatprep.subr.bf16.mxu0 %v1886_v0  ;;  %1562 = vmatprep.subr.bf16.mxu1 %v1886_v0  ;;  %v550_v38 = vmul.f32 %v2272_v36, %v2272_v36  ;;  %v663_v39 = vmul.f32 %v2165_v6, %v2162_v5  ;;  %v551_v41 = vmul.f32 %v2279_v37, %v2279_v37  ;;  %v319_v43 = vld [vmem:[%s2246_s23 + $0x20] sm:$0xff]  ;;  %v320_v46 = vld [vmem:[%s2246_s23 + $0x28] sm:$0xff]  ;;  %v321_v49 = vld [vmem:[%s2246_s23 + $0x30] sm:$0xff]  ;;  %p1807_p2 = pnand %p1806_p6, %p2472_p5  ;;  %s1809_s10 = sshll.u32 %s1887_s16, 4  ;;  %s1810_s10 = int_to_ptr.vmem [resolvable:$false] %s1809_s10 }
  0x98   : > { %v664_v42 = vmul.f32 %v2177_v10, %v2174_v9  ;;  %v552_v44 = vmul.f32 %v2288_v40, %v2288_v40  ;;  %v665_v45 = vmul.f32 %v2185_v12, %v2182_v11  ;;  %v553_v47 = vmul.f32 %v319_v43, %v319_v43  ;;  %v322_v52 = vld [vmem:[%s2246_s23 + $0x38] sm:$0xff]  ;;  %s1811_s11 = scalar_lea.vmem %s1810_s10, 256  ;;  %p1812_p12 = scmp.lt.s32.totalorder %s2417_s17, %s1810_s10 }
  0x99   : > { %v666_v48 = vmul.f32 %v2201_v18, %v2198_v17  ;;  %v554_v50 = vmul.f32 %v320_v46, %v320_v46  ;;  %v667_v51 = vmul.f32 %v2209_v20, %v2206_v19  ;;  %v555_v53 = vmul.f32 %v321_v49, %v321_v49  ;;  %p1808_p11 = pneg %p1807_p2  ;;  %p1813_p0 = scmp.lt.s32.totalorder %s1811_s11, %s1805_s5 }
  0x9a   : > { %1547 = vmatpush3.bf16.msra.mxu0 %v1886_v0  ;;  %1563 = vmatpush3.bf16.msra.mxu1 %v1886_v0  ;;  %v668_v54 = vmul.f32 %v2225_v26, %v2222_v25  ;;  %v556_v55 = vmul.f32 %v322_v52, %v322_v52  ;;  %v669_v56 = vmul.f32 %v2233_v28, %v2230_v27 }
  0x9b   : > { %1548 = vmatprep.subr.bf16.mxu0 %v1886_v0  ;;  %1564 = vmatprep.subr.bf16.mxu1 %v1886_v0  ;;  %v775_v57 = vmul.f32 %v2249_v33, %v2134_v1  ;;  %v779_v58 = vmul.f32 %v319_v43, %v2198_v17  ;;  %v776_v59 = vmul.f32 %v2272_v36, %v2162_v5  ;;  %p1814_p8 = por %p1813_p0, %p1812_p12 }
  0x9c   : > { %v780_v60 = vmul.f32 %v320_v46, %v2206_v19  ;;  %v777_v61 = vmul.f32 %v2279_v37, %v2174_v9  ;;  %v781_v62 = vmul.f32 %v321_v49, %v2222_v25  ;;  %v778_v63 = vmul.f32 %v2288_v40, %v2182_v11 }
  0x9d   : > { %v782_v1 = vmul.f32 %v322_v52, %v2230_v27  ;;  %p1815_p10 = pnand %p1814_p8, %p1808_p11 }
  0x9e   : > { %1549 = vmatpush3.bf16.msra.mxu0 %v1886_v0  ;;  %1565 = vmatpush3.bf16.msra.mxu1 %v1886_v0 }
  0x9f   : > { %1550 = vmatprep.subr.bf16.mxu0 %v1886_v0  ;;  %1566 = vmatprep.subr.bf16.mxu1 %v1886_v0 }
  0xa2   : > { %1551 = vmatpush3.bf16.msra.mxu0 %v1886_v0  ;;  %1567 = vmatpush3.bf16.msra.mxu1 %v1886_v0 }
  0xa3   : > { %1552 = vmatprep.subr.bf16.mxu0 %v1886_v0  ;;  %1568 = vmatprep.subr.bf16.mxu1 %v1886_v0 }
  0xa6   : > { %1553 = vmatpush3.bf16.msra.mxu0 %v1886_v0  ;;  %1569 = vmatpush3.bf16.msra.mxu1 %v1886_v0 }
  0xa7   : > { %1554 = vmatprep.subr.bf16.mxu0 %v1886_v0  ;;  %1570 = vmatprep.subr.bf16.mxu1 %v1886_v0 }
  0xaa   : > { %1555 = vmatpush3.bf16.msra.mxu0 %v1886_v0  ;;  %1571 = vmatpush3.bf16.msra.mxu1 %v1886_v0 }
  0xab   : > { %1556 = vmatprep.subr.bf16.mxu0 %v1886_v0  ;;  %1572 = vmatprep.subr.bf16.mxu1 %v1886_v0 }
  0xae   : > { %1557 = vmatpush3.bf16.msra.mxu0 %v1886_v0  ;;  %1573 = vmatpush3.bf16.msra.mxu1 %v1886_v0 }
  0xaf   : > { %1574 = vmatprep.subr.bf16.mxu0 %v1886_v0  ;;  %1590 = vmatprep.subr.bf16.mxu1 %v1886_v0 }
  0xb1   : > { %1355 = vmatmul.mubr.f32.vlgmr.msra.gmra.mrb[0].mxu0 %v324_v7  ;;  %1399 = vmatmul.mubr.f32.vlgmr.msra.gmra.mrb[0].mxu1 %v437_v8 }
  0xb2   : > { %1575 = vmatpush3.bf16.msra.mxu0 %v1886_v0  ;;  %1591 = vmatpush3.bf16.msra.mxu1 %v1886_v0 }
  0xb3   : > { %1576 = vmatprep.subr.bf16.mxu0 %v1886_v0  ;;  %1592 = vmatprep.subr.bf16.mxu1 %v1886_v0 }
  0xb4   : > { %1357 = vmatprep.mubr.f32.mxu0 %v325_v13  ;;  %1401 = vmatprep.mubr.f32.mxu1 %v438_v14 }
  0xb5   : > { %1358 = vmatmul.mubr.f32.gmra.mrb[2].mxu0 %v326_v15  ;;  %1402 = vmatmul.mubr.f32.gmra.mrb[2].mxu1 %v439_v16 }
  0xb6   : > { %1577 = vmatpush3.bf16.msra.mxu0 %v1886_v0  ;;  %1593 = vmatpush3.bf16.msra.mxu1 %v1886_v0 }
  0xb7   : > { %1578 = vmatprep.subr.bf16.mxu0 %v1886_v0  ;;  %1594 = vmatprep.subr.bf16.mxu1 %v1886_v0 }
  0xb8   : > { %1360 = vmatprep.mubr.f32.mxu0 %v327_v21  ;;  %1404 = vmatprep.mubr.f32.mxu1 %v440_v22 }
  0xb9   : > { %1361 = vmatmul.mubr.f32.gmra.mrb[4].mxu0 %v328_v23  ;;  %1405 = vmatmul.mubr.f32.gmra.mrb[4].mxu1 %v441_v24 }
  0xba   : > { %1579 = vmatpush3.bf16.msra.mxu0 %v1886_v0  ;;  %1595 = vmatpush3.bf16.msra.mxu1 %v1886_v0 }
  0xbb   : > { %1580 = vmatprep.subr.bf16.mxu0 %v1886_v0  ;;  %1596 = vmatprep.subr.bf16.mxu1 %v1886_v0 }
  0xbc   : > { %1363 = vmatprep.mubr.f32.mxu0 %v329_v29  ;;  %1407 = vmatprep.mubr.f32.mxu1 %v442_v30 }
  0xbd   : > { %1364 = vmatmul.mubr.f32.gmra.mrb[6].mxu0 %v330_v31  ;;  %1408 = vmatmul.mubr.f32.gmra.mrb[6].mxu1 %v443_v32 }
  0xbe   : > { %1581 = vmatpush3.bf16.msra.mxu0 %v1886_v0  ;;  %1597 = vmatpush3.bf16.msra.mxu1 %v1886_v0 }
  0xbf   : > { %1582 = vmatprep.subr.bf16.mxu0 %v1886_v0  ;;  %1598 = vmatprep.subr.bf16.mxu1 %v1886_v0 }
  0xc0   : > { %1442 = vmatprep.mubr.f32.mxu0 %v549_v35  ;;  %1486 = vmatprep.mubr.f32.mxu1 %v662_v34 }
  0xc2   : > { %1583 = vmatpush3.bf16.msra.mxu0 %v1886_v0  ;;  %1599 = vmatpush3.bf16.msra.mxu1 %v1886_v0 }
  0xc3   : > { %1584 = vmatprep.subr.bf16.mxu0 %v1886_v0  ;;  %1600 = vmatprep.subr.bf16.mxu1 %v1886_v0 }
  0xc6   : > { %1585 = vmatpush3.bf16.msra.mxu0 %v1886_v0  ;;  %1601 = vmatpush3.bf16.msra.mxu1 %v1886_v0 }
  0xc7   : > { %1586 = vmatprep.subr.bf16.mxu0 %v1886_v0  ;;  %1602 = vmatprep.subr.bf16.mxu1 %v1886_v0 }
  0xca   : > { %1587 = vmatpush3.bf16.msra.mxu0 %v1886_v0  ;;  %1603 = vmatpush3.bf16.msra.mxu1 %v1886_v0 }
  0xcb   : > { %1588 = vmatprep.subr.bf16.mxu0 %v1886_v0  ;;  %1604 = vmatprep.subr.bf16.mxu1 %v1886_v0 }
  0xce   : > { %1589 = vmatpush3.bf16.msra.mxu0 %v1886_v0  ;;  %1605 = vmatpush3.bf16.msra.mxu1 %v1886_v0 }
  0xcf   : > { %1606 = vmatprep.subr.bf16.mxu0 %v1886_v0  ;;  %1622 = vmatprep.subr.bf16.mxu1 %v1886_v0 }
  0xd1   : > { %1443 = vmatmul.mubr.f32.vlgmr.msra.gmra.mrb[8].mxu0 %v550_v38  ;;  %1487 = vmatmul.mubr.f32.vlgmr.msra.gmra.mrb[8].mxu1 %v663_v39 }
  0xd2   : > { %1607 = vmatpush3.bf16.msra.mxu0 %v1886_v0  ;;  %1630 = vmatpush3.bf16.msra.mxu1 %v1886_v0 }
  0xd3   : > { %1445 = vmatprep.mubr.f32.mxu0 %v551_v41  ;;  %1489 = vmatprep.mubr.f32.mxu1 %v664_v42 }
  0xd4   : > { %1608 = vmatprep.subr.bf16.mxu0 %v1886_v0  ;;  %1623 = vmatprep.subr.bf16.mxu1 %v1886_v0 }
  0xd5   : > { %1446 = vmatmul.mubr.f32.gmra.mrb[10].mxu0 %v552_v44  ;;  %1490 = vmatmul.mubr.f32.gmra.mrb[10].mxu1 %v665_v45 }
  0xd6   : > { %1609 = vmatpush3.bf16.msra.mxu0 %v1886_v0  ;;  %1631 = vmatpush3.bf16.msra.mxu1 %v1886_v0 }
  0xd7   : > { %1448 = vmatprep.mubr.f32.mxu0 %v553_v47  ;;  %1492 = vmatprep.mubr.f32.mxu1 %v666_v48 }
  0xd8   : > { %1610 = vmatprep.subr.bf16.mxu0 %v1886_v0  ;;  %1624 = vmatprep.subr.bf16.mxu1 %v1886_v0 }
  0xd9   : > { %1449 = vmatmul.mubr.f32.gmra.mrb[12].mxu0 %v554_v50  ;;  %1493 = vmatmul.mubr.f32.gmra.mrb[12].mxu1 %v667_v51 }
  0xda   : > { %1611 = vmatpush3.bf16.msra.mxu0 %v1886_v0  ;;  %1632 = vmatpush3.bf16.msra.mxu1 %v1886_v0 }
  0xdb   : > { %1451 = vmatprep.mubr.f32.mxu0 %v555_v53  ;;  %1495 = vmatprep.mubr.f32.mxu1 %v668_v54 }
  0xdc   : > { %1612 = vmatprep.subr.bf16.mxu0 %v1886_v0  ;;  %1625 = vmatprep.subr.bf16.mxu1 %v1886_v0 }
  0xdd   : > { %1452 = vmatmul.mubr.f32.gmra.mrb[14].mxu0 %v556_v55  ;;  %1496 = vmatmul.mubr.f32.gmra.mrb[14].mxu1 %v669_v56 }
  0xde   : > { %1613 = vmatpush3.bf16.msra.mxu0 %v1886_v0  ;;  %1633 = vmatpush3.bf16.msra.mxu1 %v1886_v0 }
  0xdf   : > { %1614 = vmatprep.subr.bf16.mxu0 %v1886_v0  ;;  %1626 = vmatprep.subr.bf16.mxu1 %v1886_v0 }
  0xe0   : > { %1530 = vmatprep.mubr.f32.mxu0 %v775_v57  ;;  %1536 = vmatprep.mubr.f32.mxu1 %v779_v58 }
  0xe2   : > { %1615 = vmatpush3.bf16.msra.mxu0 %v1886_v0  ;;  %1634 = vmatpush3.bf16.msra.mxu1 %v1886_v0 }
  0xe3   : > { %1616 = vmatprep.subr.bf16.mxu0 %v1886_v0  ;;  %1627 = vmatprep.subr.bf16.mxu1 %v1886_v0 }
  0xe6   : > { %1617 = vmatpush3.bf16.msra.mxu0 %v1886_v0  ;;  %1635 = vmatpush3.bf16.msra.mxu1 %v1886_v0 }
  0xe7   : > { %1618 = vmatprep.subr.bf16.mxu0 %v1886_v0  ;;  %1628 = vmatprep.subr.bf16.mxu1 %v1886_v0 }
  0xea   : > { %1619 = vmatpush3.bf16.msra.mxu0 %v1886_v0  ;;  %1636 = vmatpush3.bf16.msra.mxu1 %v1886_v0 }
  0xeb   : > { %1620 = vmatprep.subr.bf16.mxu0 %v1886_v0  ;;  %1629 = vmatprep.subr.bf16.mxu1 %v1886_v0 }
  0xee   : > { %1621 = vmatpush3.bf16.msra.mxu0 %v1886_v0  ;;  %1637 = vmatpush3.bf16.msra.mxu1 %v1886_v0 }
  0xf1   : > { %1531 = vmatmul.mubr.f32.vlgmr.msra.gmra.mrb[16].mxu0 %v776_v59  ;;  %1537 = vmatmul.mubr.f32.vlgmr.msra.gmra.mrb[16].mxu1 %v780_v60 }
  0xf2   : > { %1533 = vmatprep.mubr.f32.mxu0 %v777_v61  ;;  %1539 = vmatprep.mubr.f32.mxu1 %v781_v62 }
  0xf5   : > { %1534 = vmatmul.mubr.f32.gmra.mrb[18].mxu0 %v778_v63  ;;  %1540 = vmatmul.mubr.f32.gmra.mrb[18].mxu1 %v782_v1 }
 0x184   : > { %v1356_v2 = vpop.f32.mrb[0].mxu0  ;;  %v1400_v3 = vpop.f32.mrb[0].mxu1 }
 0x185   : > { %v889_v4 = vmul.f32 %v1400_v3, %v1356_v2  ;;  %v397_v0 = vpop.f32.mrb[1].mxu0  ;;  %v510_v5 = vpop.f32.mrb[1].mxu1 }
 0x186   : > { %v888_v6 = vmul.f32 %v510_v5, %v397_v0 }
 0x187   : > { %v897_v25 = vmax.f32 %v889_v4, 1e-16 }
 0x188   : > { %v1359_v7 = vpop.f32.mrb[2].mxu0  ;;  %v1403_v8 = vpop.f32.mrb[2].mxu1  ;;  %v896_v26 = vmax.f32 %v888_v6, 1e-16 }
 0x189   : > { %v891_v9 = vmul.f32 %v1403_v8, %v1359_v7  ;;  %v407_v10 = vpop.f32.mrb[3].mxu0  ;;  %v520_v12 = vpop.f32.mrb[3].mxu1  ;;  %1689 = vrsqrt.f32 %v897_v25 }
 0x18a   : > { %v890_v13 = vmul.f32 %v520_v12, %v407_v10  ;;  %1691 = vrsqrt.f32 %v896_v26 }
 0x18b   : > { %v899_v27 = vmax.f32 %v891_v9, 1e-16 }
 0x18c   : > { %v1362_v14 = vpop.f32.mrb[4].mxu0  ;;  %v1406_v11 = vpop.f32.mrb[4].mxu1  ;;  %v898_v28 = vmax.f32 %v890_v13, 1e-16 }
 0x18d   : > { %v893_v15 = vmul.f32 %v1406_v11, %v1362_v14  ;;  %v417_v16 = vpop.f32.mrb[5].mxu0  ;;  %v530_v17 = vpop.f32.mrb[5].mxu1  ;;  %1693 = vrsqrt.f32 %v899_v27 }
 0x18e   : > { %v892_v18 = vmul.f32 %v530_v17, %v417_v16  ;;  %1695 = vrsqrt.f32 %v898_v28 }
 0x18f   : > { %v901_v29 = vmax.f32 %v893_v15, 1e-16 }
 0x190   : > { %v1365_v19 = vpop.f32.mrb[6].mxu0  ;;  %v1409_v20 = vpop.f32.mrb[6].mxu1  ;;  %v900_v30 = vmax.f32 %v892_v18, 1e-16 }
 0x191   : > { %v895_v21 = vmul.f32 %v1409_v20, %v1365_v19  ;;  %v427_v22 = vpop.f32.mrb[7].mxu0  ;;  %v540_v23 = vpop.f32.mrb[7].mxu1  ;;  %1697 = vrsqrt.f32 %v901_v29  ;;  %v2374_v20 = vstv %s1194_s30 }
 0x192   : > { %v894_v24 = vmul.f32 %v540_v23, %v427_v22  ;;  %1699 = vrsqrt.f32 %v900_v30 }
 0x193   : > { %v903_v31 = vmax.f32 %v895_v21, 1e-16  ;;  %v1690_v33 = vpop.eup %1689 }
 0x194   : > { %v902_v32 = vmax.f32 %v894_v24, 1e-16  ;;  %v1692_v36 = vpop.eup %1691 }
 0x195   : > { %1701 = vrsqrt.f32 %v903_v31 }
 0x196   : > { %1703 = vrsqrt.f32 %v902_v32 }
 0x197   : > { %v1694_v41 = vpop.eup %1693 }
 0x198   : > { %v1696_v44 = vpop.eup %1695 }
 0x19b   : > { %v1698_v51 = vpop.eup %1697 }
 0x19c   : > { %v1700_v54 = vpop.eup %1699 }
 0x19f   : > { %v1702_v61 = vpop.eup %1701 }
 0x1a0   : > { %v1704_v1 = vpop.eup %1703 }
 0x1a4   : > { %v1444_v34 = vpop.f32.mrb[8].mxu0  ;;  %v1488_v35 = vpop.f32.mrb[8].mxu1 }
 0x1a5   : > { %v921_v37 = vmul.f32 %v1444_v34, %v1356_v2  ;;  %v2354_v38 = vmul.f32 %v1690_v33, %v1488_v35  ;;  %v623_v39 = vpop.f32.mrb[9].mxu0  ;;  %v736_v40 = vpop.f32.mrb[9].mxu1 }
 0x1a6   : > { %v920_v42 = vmul.f32 %v623_v39, %v397_v0  ;;  %v2356_v43 = vmul.f32 %v1692_v36, %v736_v40 }
 0x1a7   : > { %v929_v9 = vmax.f32 %v921_v37, 1e-16  ;;  %v953_v35 = vsub.f32 1.0, %v2354_v38 }
 0x1a8   : > { %v1447_v45 = vpop.f32.mrb[10].mxu0  ;;  %v1491_v46 = vpop.f32.mrb[10].mxu1  ;;  %v928_v12 = vmax.f32 %v920_v42, 1e-16 }
 0x1a9   : > { %v923_v47 = vmul.f32 %v1447_v45, %v1359_v7  ;;  %v2358_v48 = vmul.f32 %v1694_v41, %v1491_v46  ;;  %v633_v49 = vpop.f32.mrb[11].mxu0  ;;  %v746_v50 = vpop.f32.mrb[11].mxu1  ;;  %1705 = vrsqrt.f32 %v929_v9 }
 0x1aa   : > { %v922_v52 = vmul.f32 %v633_v49, %v407_v10  ;;  %v2360_v53 = vmul.f32 %v1696_v44, %v746_v50  ;;  %v977_v10 = vlaneseq  ;;  %1707 = vrsqrt.f32 %v928_v12 }
 0x1ab   : > { %v931_v11 = vmax.f32 %v923_v47, 1e-16  ;;  %v952_v44 = vsub.f32 1.0, %v2356_v43 }
 0x1ac   : > { %v1450_v55 = vpop.f32.mrb[12].mxu0  ;;  %v1494_v56 = vpop.f32.mrb[12].mxu1  ;;  %v2370_v15 = vshrl.u32 %v977_v10, 7 }
 0x1ad   : > { %v925_v57 = vmul.f32 %v1450_v55, %v1362_v14  ;;  %v2362_v58 = vmul.f32 %v1698_v51, %v1494_v56  ;;  %v643_v59 = vpop.f32.mrb[13].mxu0  ;;  %v756_v60 = vpop.f32.mrb[13].mxu1  ;;  %v955_v55 = vsub.f32 1.0, %v2358_v48 }
 0x1ae   : > { %v924_v62 = vmul.f32 %v643_v59, %v417_v16  ;;  %v2364_v63 = vmul.f32 %v1700_v54, %v756_v60  ;;  %v930_v16 = vmax.f32 %v922_v52, 1e-16  ;;  %v983_v21 = vadd.s32 40, %v2370_v15 }
 0x1af   : > { %v933_v13 = vmax.f32 %v925_v57, 1e-16  ;;  %v987_v24 = vadd.s32 %v2374_v20, %v2370_v15  ;;  %v981_v29 = vadd.s32 24, %v2370_v15  ;;  %v980_v33 = vadd.s32 16, %v2370_v15 }
 0x1b0   : > { %v1453_v2 = vpop.f32.mrb[14].mxu0  ;;  %v1497_v3 = vpop.f32.mrb[14].mxu1  ;;  %v932_v14 = vmax.f32 %v924_v62, 1e-16  ;;  %v2382_v27 = vadd.s32 %v2374_v20, %v983_v21  ;;  %v957_v36 = vsub.f32 1.0, %v2362_v58  ;;  %v956_v45 = vsub.f32 1.0, %v2364_v63 }
 0x1b1   : > { %v927_v4 = vmul.f32 %v1453_v2, %v1365_v19  ;;  %v2366_v0 = vmul.f32 %v1702_v61, %v1497_v3  ;;  %v653_v5 = vpop.f32.mrb[15].mxu0  ;;  %v766_v6 = vpop.f32.mrb[15].mxu1  ;;  %1709 = vrsqrt.f32 %v933_v13  ;;  %v979_v19 = vadd.s32 8, %v2370_v15 }
 0x1b2   : > { %v926_v7 = vmul.f32 %v653_v5, %v427_v22  ;;  %v2368_v8 = vmul.f32 %v1704_v1, %v766_v6  ;;  %1711 = vrsqrt.f32 %v932_v14  ;;  %v982_v22 = vadd.s32 32, %v2370_v15 }
 0x1b3   : > { %v935_v17 = vmax.f32 %v927_v4, 1e-16  ;;  %1713 = vrsqrt.f32 %v931_v11  ;;  %v988_v23 = vadd.s32 %v2374_v20, %v979_v19  ;;  %v1706_v25 = vpop.eup %1705  ;;  %vm995_vm2 = vcmp.lt.s32.totalorder %v987_v24, 200 }
 0x1b4   : > { %v934_v18 = vmax.f32 %v926_v7, 1e-16  ;;  %1715 = vrsqrt.f32 %v930_v16  ;;  %v1708_v26 = vpop.eup %1707  ;;  %v2385_v28 = vadd.s32 %v2374_v20, %v982_v22  ;;  %v990_v52 = vadd.s32 %v2374_v20, %v981_v29 }
 0x1b5   : > { %1717 = vrsqrt.f32 %v935_v17  ;;  %vm996_vm0 = vcmp.lt.s32.totalorder %v988_v23, 200  ;;  %v985_v38 = vadd.s32 56, %v2370_v15  ;;  %v989_v43 = vadd.s32 %v2374_v20, %v980_v33 }
 0x1b6   : > { %1719 = vrsqrt.f32 %v934_v18  ;;  %v959_v61 = vsub.f32 1.0, %v2366_v0  ;;  %v954_v4 = vsub.f32 1.0, %v2360_v53  ;;  %v984_v12 = vadd.s32 48, %v2370_v15 }
 0x1b7   : > { %v958_v13 = vsub.f32 1.0, %v2368_v8  ;;  %vm998_vm3 = vcmp.lt.s32.totalorder %v990_v52, 200  ;;  %vm997_vm4 = vcmp.lt.s32.totalorder %v989_v43, 200  ;;  %vm999_vm5 = vcmp.lt.s32.totalorder %v2385_v28, 200 }
 0x1b8   : > { %v993_v15 = vadd.s32 %v2374_v20, %v984_v12  ;;  %vm1000_vm6 = vcmp.lt.s32.totalorder %v2382_v27, 200 }
 0x1ba   : > { %vm1001_vm7 = vcmp.lt.s32.totalorder %v993_v15, 200 }
 0x1bb   : > { %v1710_v30 = vpop.eup %1709 }
 0x1bc   : > { %v1712_v34 = vpop.eup %1711 }
 0x1bd   : > { %v1714_v42 = vpop.eup %1713 }
 0x1be   : > { %v1716_v49 = vpop.eup %1715 }
 0x1bf   : > { %v1718_v54 = vpop.eup %1717 }
 0x1c0   : > { %v1720_v60 = vpop.eup %1719 }
 0x1c4   : > { %v1532_v31 = vpop.f32.mrb[16].mxu0  ;;  %v1538_v32 = vpop.f32.mrb[16].mxu1 }
 0x1c5   : > { %v945_v37 = vmul.f32 %v1706_v25, %v1532_v31  ;;  %v949_v39 = vmul.f32 %v1710_v30, %v1538_v32  ;;  %v849_v40 = vpop.f32.mrb[17].mxu0  ;;  %v869_v41 = vpop.f32.mrb[17].mxu1  ;;  %v994_v25 = vadd.s32 %v2374_v20, %v985_v38 }
 0x1c6   : > { %v944_v46 = vmul.f32 %v1708_v26, %v849_v40  ;;  %v948_v47 = vmul.f32 %v1712_v34, %v869_v41 }
 0x1c7   : > { %v961_v50 = vadd.f32 %v953_v35, %v945_v37  ;;  %v965_v51 = vadd.f32 %v957_v36, %v949_v39  ;;  %vm1002_vm8 = vcmp.lt.s32.totalorder %v994_v25, 200 }
 0x1c8   : > { %v960_v56 = vadd.f32 %v952_v44, %v944_v46  ;;  %v964_v57 = vadd.f32 %v956_v45, %v948_v47  ;;  %v1535_v58 = vpop.f32.mrb[18].mxu0  ;;  %v1541_v59 = vpop.f32.mrb[18].mxu1 }
 0x1c9   : > { %v969_v62 = vmax.f32 %v961_v50, 0.0  ;;  %v947_v63 = vmul.f32 %v1714_v42, %v1535_v58  ;;  %v951_v1 = vmul.f32 %v1718_v54, %v1541_v59  ;;  %v859_v2 = vpop.f32.mrb[19].mxu0  ;;  %v879_v3 = vpop.f32.mrb[19].mxu1  ;;  %v973_v22 = vmax.f32 %v965_v51, 0.0 }
 0x1ca   : > { %v968_v5 = vmax.f32 %v960_v56, 0.0  ;;  %v946_v6 = vmul.f32 %v1716_v49, %v859_v2  ;;  %v950_v7 = vmul.f32 %v1720_v60, %v879_v3  ;;  %v972_v18 = vmax.f32 %v964_v57, 0.0 }
 0x1cb   : > { %v1004_v48 = vsel %vm996_vm0, %v969_v62, 0.0  ;;  %v963_v9 = vadd.f32 %v955_v55, %v947_v63  ;;  %v967_v10 = vadd.f32 %v959_v61, %v951_v1  ;;  %v1008_v32 = vsel %vm1000_vm6, %v973_v22, 0.0 }
 0x1cc   : > { %v1013_v0 = vsel %vm1011_vm1, %v1004_v48, 0.0  ;;  %v1003_v14 = vsel %vm995_vm2, %v968_v5, 0.0  ;;  %v962_v11 = vadd.f32 %v954_v4, %v946_v6  ;;  %v966_v21 = vadd.f32 %v958_v13, %v950_v7 }
 0x1cd   : > { %v1012_v16 = vsel %vm1011_vm1, %v1003_v14, 0.0  ;;  %v971_v17 = vmax.f32 %v963_v9, 0.0  ;;  %v1007_v26 = vsel %vm999_vm5, %v972_v18, 0.0  ;;  %v975_v33 = vmax.f32 %v967_v10, 0.0 }
 0x1ce   : > { %v1014_v53 = vadd.f32 %v1013_v0, %v1012_v16  ;;  %v970_v19 = vmax.f32 %v962_v11, 0.0  ;;  %v974_v30 = vmax.f32 %v966_v21, 0.0  ;;  %v1019_v34 = vsel %vm1011_vm1, %v1007_v26, 0.0 }
 0x1cf   : > { %v1006_v8 = vsel %vm998_vm3, %v971_v17, 0.0  ;;  %v1021_v27 = vsel %vm1011_vm1, %v1008_v32, 0.0  ;;  %v1010_v37 = vsel %vm1002_vm8, %v975_v33, 0.0 }
 0x1d0   : > { %v1005_v23 = vsel %vm997_vm4, %v970_v19, 0.0  ;;  %v1017_v31 = vsel %vm1011_vm1, %v1006_v8, 0.0  ;;  %v1009_v35 = vsel %vm1001_vm7, %v974_v30, 0.0  ;;  %v1025_v41 = vsel %vm1011_vm1, %v1010_v37, 0.0 }
 0x1d1   : > { %v1015_v24 = vsel %vm1011_vm1, %v1005_v23, 0.0  ;;  %v1023_v20 = vsel %vm1011_vm1, %v1009_v35, 0.0 }
 0x1d2   : > { %v1016_v29 = vadd.f32 %v1015_v24, %v1014_v53 }
 0x1d4   : > { %v1018_v28 = vadd.f32 %v1017_v31, %v1016_v29 }
 0x1d6   : > { %v1020_v36 = vadd.f32 %v1019_v34, %v1018_v28 }
 0x1d8   : > { %v1022_v39 = vadd.f32 %v1021_v27, %v1020_v36 }
 0x1da   : > { %v1024_v40 = vadd.f32 %v1023_v20, %v1022_v39 }
 0x1dc   : > { %v1026_v42 = vadd.f32 %v1025_v41, %v1024_v40 }
 0x1de   : > { %1027 = vadd.xlane.f32.xlu0 %v1026_v42 }
 0x26b   : > { %v1028_v44 = vpop.xlane.xlu0 %1027 }
 0x26c   : > { %v1029_v45 = vrot.slane %v1028_v44, 4 }
 0x26e   : > { %v1030_v46 = vadd.f32 %v1029_v45, %v1028_v44 }
 0x270   : > { %v1031_v47 = vrot.slane %v1030_v46, 2 }
 0x272   : > { %v1032_v49 = vadd.f32 %v1031_v47, %v1030_v46 }
 0x274   : > { %v1033_v50 = vrot.slane %v1032_v49, 1 }
 0x276   : > { %v1034_v51 = vadd.f32 %v1033_v50, %v1032_v49 }
 0x278   : > { %1638 = vpush %v1034_v51 }
 0x2a9   : > { %s1639_s20 = spop %1638 }
 0x2aa   : > { %v1036_v52 = vstv %s1639_s20 }
 0x2ab   : > { %1037 = vst [vmem:[%s283_s9] sm:$0xff] %v1036_v52 }
 0x2ac   : > { %1818 = shalt.err (!%p1815_p10)
}
 0x2ad   : > { %s1819_s6 = scalar_lea.hbm %s2422_s22, 128  ;;  %s1823_s7 = scalar_lea.hbm %s2466_s3, 512 }
 0x2ae   : > { %p1820_p1 = scmp.ne.s32.totalorder %s2422_s22, %s1819_s6  ;;  %p1824_p3 = scmp.lt.u32.totalorder %s2422_s22, %s2466_s3 }
 0x2af   : > { %p1825_p9 = scmp.lt.u32.totalorder %s1823_s7, %s1819_s6  ;;  %p1827_p6 = scmp.lt.u32.totalorder %s1819_s6, %s2422_s22 }
 0x2b0   : > { %p1821_p4 = pnand %p1820_p1, %p2472_p5 }
 0x2b1   : > { %p1826_p13 = por %p1825_p9, %p1824_p3 }
 0x2b2   : > { %p1822_p7 = pneg %p1821_p4 }
 0x2b3   : > { %p1828_p2 = por %p1827_p6, %p1826_p13 }
 0x2b5   : > { %p1829_p11 = pnand %p1828_p2, %p1822_p7 }
 0x2b7   : > { %1832 = shalt.err (!%p1829_p11)
}
 0x2b8   : > { %1643 = dma.vmem_to_hbm [thread:$0]  (%p2472_p5), %s2417_s17, 128, %s2422_s22, %s1039_s4  }
 0x2b9 PF: > { %p1649_p12 = scmp.ge.s32.totalorder %s1875_s15, 2  ;;  %s1064_s8 = sand.u32 1, %s1863_s12  }
 0x2ba   : > { %p2473_p0 = scmp.ne.s32.totalorder %s2471_s25, 0  ;;  %s1065_s9 = scalar_lea.sflag [#allocation4], %s1064_s8 }
 0x2bc   : > { %p1646_p8 = pnand %p1649_p12, %p2473_p0 }
 0x2be   : > { %1858 = dma.done.wait (!%p1646_p8), %s1065_s9, 128  }
 0x2bf   : > { %1860 = vsyncadd (!%p1646_p8), %s1065_s9, 4294967168  ;;  %p19_p10 = scmp.ge.s32.totalorder %s1933_s18, 6   ;;  %s2474_s12 = smov %s1867_s13 }
 0x2c0   : > { %s2475_s13 = smov %s1871_s14  ;;  %s2476_s14 = smov %s1945_s21 }
 0x2c1   : > { %s2477_s15 = smov %s1933_s18  ;;  %21 = sbr.rel (!%p19_p10) target bundleno = 7 (0x7), region = 101 }
 0x2c8   :  { %1070 = vsyncpa [#allocation3], 1 }
 0x2c9   :  { %1072 = vsyncpa [#allocation3 + $0x1], 1 }
 0x2ca   :  { %1073 = vsyncpa [#allocation6], 1 }
 0x2cb   :  { %1075 = vsyncpa [#allocation6 + $0x1], 1 }
 0x2cc   :  { %1076 = vsyncpa [#allocation4], 1 }
 0x2cd   :  { %1078 = vsyncpa [#allocation4 + $0x1], 1 }

</bundles_post_ra>
